<compile_context>
chip_gen: v5e
topology: v5e:2x2
jax: 0.10.0
libtpu: 0.0.40
codegen_flags: <defaults>
</compile_context>

<pallas_src>
import functools

import jax
import jax.numpy as jnp
from jax.experimental import pallas as pl
from jax.experimental.pallas import tpu as pltpu


def _ceil_to(x, m):
    return (x + m - 1) // m * m


def attention_kernel(qh_ref, eo_ref, uabd_ref, vabd_ref, ctx_ref, w_ref,
                     *, approx_recip):
    # qh_ref  : (nb, H)      query projection Wa(last_hidden)        (f32 or bf16)
    # eo_ref  : (nb, L*K)    encoder outputs, time folded into lanes (f32 or bf16)
    # uabd_ref: (L*K, L*H)   block-diag(Ua^T): column block l == Ua^T for step l
    # vabd_ref: (L*H, L)     block-diag(va^T): one va column per time step (f32)
    # ctx_ref : (nb, K)      context vector out
    # w_ref   : (nb, L)      attention weights out
    nb = qh_ref.shape[0]
    L = w_ref.shape[-1]
    K = ctx_ref.shape[-1]

    eo = eo_ref[...]                                                # (nb, L*K)

    # Key projection for all L time steps in one full-lane-width MXU matmul.
    kh = jnp.dot(eo, uabd_ref[...],
                 preferred_element_type=jnp.float32)                # (nb, L*H) f32

    # Add the per-row query projection to every time step's H-block, then tanh.
    q = qh_ref[...].astype(jnp.float32)                             # (nb, H)
    q_t = jnp.concatenate([q] * L, axis=-1)                         # (nb, L*H)
    e = jnp.tanh(kh + q_t)                                          # (nb, L*H) f32

    # Attention energies via the block-diagonal va projection -> (nb, L).
    s = jnp.dot(e, vabd_ref[...],
                preferred_element_type=jnp.float32)                 # (nb, L) f32

    # Softmax over the time axis (lane axis), f32 throughout.
    m = jnp.max(s, axis=-1, keepdims=True)
    p = jnp.exp(s - m)
    denom = jnp.sum(p, axis=-1, keepdims=True)
    if approx_recip:
        w = p * pl.reciprocal(denom, approx=True)   # EUP vrcp, off the VPU path
    else:
        w = p / denom                               # exact divide for f32 parity
    # NOTE: out-of-bounds rows of a ragged last block hold garbage here; their
    # writes below are dropped by Pallas, so valid rows are unaffected.

    # Context vector: unrolled VPU multiply-accumulate over the small static time
    # axis.  eo[:, t*K:(t+1)*K] is a contiguous lane slice, so this is L
    # broadcast-FMAs over (nb, K) -- no M=1 batched matmuls on the MXU.
    ctx = jnp.zeros((nb, K), jnp.float32)
    for t in range(L):
        ctx = ctx + w[:, t:t + 1] * eo[:, t * K:(t + 1) * K].astype(jnp.float32)

    ctx_ref[...] = ctx.astype(ctx_ref.dtype)
    w_ref[...] = w.astype(w_ref.dtype)


def attention_forward(last_hidden, encoder_outputs, Wa_w, Ua_w, va_w,
                      *, block_batch=None, compute_dtype=None):
    """
    last_hidden     : (N, Q)      query
    encoder_outputs : (N, L, K)   keys / values
    Wa_w            : (H, Q)      nn.Linear weight layout (out, in), no bias
    Ua_w            : (H, K)
    va_w            : (1, H)
    Returns (context (N, K), attention_weights (N, L)).

    compute_dtype=jnp.bfloat16 selects the fast path (bf16 HBM streams + approx
    reciprocal); the default keeps f32 everywhere for parity with the module.
    """
    N, Q = last_hidden.shape
    _, L, K = encoder_outputs.shape
    H = Wa_w.shape[0]
    out_dtype = last_hidden.dtype
    cdt = jnp.dtype(out_dtype if compute_dtype is None else compute_dtype)
    fast = cdt == jnp.dtype(jnp.bfloat16)

    # Hoisted query projection: one full-occupancy matmul in XLA.
    qh = jnp.dot(last_hidden, Wa_w.T).astype(cdt)                    # (N, H)

    # Lane-dense projection weights (built once; 256x256 at the test shapes).
    ua_bd = jnp.kron(jnp.eye(L, dtype=jnp.float32),
                     Ua_w.T.astype(jnp.float32)).astype(cdt)         # (L*K, L*H)
    va_bd = jnp.kron(jnp.eye(L, dtype=jnp.float32),
                     va_w.T.astype(jnp.float32))                     # (L*H, L) f32

    # Free reshape: fold time into the lane axis of the bandwidth-dominant input.
    eo_flat = encoder_outputs.reshape(N, L * K).astype(cdt)          # (N, L*K)

    # ---- batch tile selection ----------------------------------------------
    # Big tiles amortize the ~0.35us per-grid-step overhead; keep >=2 grid steps
    # when possible so both TensorCores get work on v7x.  nb must be a multiple
    # of 8 (sublane rule on the (nb, H)/(nb, K)/(nb, L) blocks) unless a single
    # block covers the whole batch.
    if block_batch is not None:
        nb = int(block_batch)
    else:
        nb = 1024                              # sweep 512-2048; keep <=1024 on v7x
        if 8 < N <= 2 * nb:
            nb = max(8, _ceil_to(pl.cdiv(N, 2), 8))
    if nb >= N:
        nb = N                                 # one block == full (small) batch
    else:
        nb = max(8, (nb // 8) * 8)
    grid = (pl.cdiv(N, nb),)                   # ragged last block; no jnp.pad copy

    kernel = functools.partial(attention_kernel, approx_recip=fast)

    ctx, w = pl.pallas_call(
        kernel,
        out_shape=(
            jax.ShapeDtypeStruct((N, K), out_dtype),
            jax.ShapeDtypeStruct((N, L), out_dtype),
        ),
        grid=grid,
        in_specs=[
            pl.BlockSpec((nb, H), lambda b: (b, 0)),
            pl.BlockSpec((nb, L * K), lambda b: (b, 0)),
            pl.BlockSpec((L * K, L * H), lambda b: (0, 0)),   # constant -> fetched once
            pl.BlockSpec((L * H, L), lambda b: (0, 0)),       # constant -> fetched once
        ],
        out_specs=(
            pl.BlockSpec((nb, K), lambda b: (b, 0)),
            pl.BlockSpec((nb, L), lambda b: (b, 0)),
        ),
        compiler_params=pltpu.CompilerParams(
            dimension_semantics=("parallel",),
            vmem_limit_bytes=48 * 1024 * 1024,   # headroom for nb sweeps, < v7x's 64 MiB
        ),
    )(qh, eo_flat, ua_bd, va_bd)

    return ctx, w


def attention_reference(last_hidden, encoder_outputs, Wa_w, Ua_w, va_w):
    # pure-JAX reference matching the PyTorch forward exactly
    qh = last_hidden @ Wa_w.T                                        # (N, H)
    kh = encoder_outputs @ Ua_w.T                                    # (N, L, H)
    energies = (jnp.tanh(kh + qh[:, None, :]) @ va_w.T)[..., 0]      # (N, L)
    attw = jax.nn.softmax(energies, axis=1)                          # (N, L)
    ctx = jnp.einsum("nlk,nl->nk", encoder_outputs, attw)            # (N, K)
    return ctx, attw


if __name__ == "__main__":
    # small shapes consistent with the module: query_size = key_size = 2*C
    N, L, C, H = 2, 8, 16, 32
    Q = K = 2 * C  # 32

    key = jax.random.PRNGKey(0)
    k_lh, k_eo, k_wa, k_ua, k_va = jax.random.split(key, 5)

    last_hidden = jax.random.normal(k_lh, (N, Q), dtype=jnp.float32)
    encoder_outputs = jax.random.normal(k_eo, (N, L, K), dtype=jnp.float32)

    # deterministic parameter init (nn.Linear weight shapes: (out, in), no bias)
    Wa_w = 0.1 * jax.random.normal(k_wa, (H, Q), dtype=jnp.float32)
    Ua_w = 0.1 * jax.random.normal(k_ua, (H, K), dtype=jnp.float32)
    va_w = 0.1 * jax.random.normal(k_va, (1, H), dtype=jnp.float32)

    # 1) f32 path, single block
    ctx, attw = attention_forward(last_hidden, encoder_outputs, Wa_w, Ua_w, va_w)
    jax.block_until_ready((ctx, attw))
    ctx_ref, attw_ref = attention_reference(last_hidden, encoder_outputs, Wa_w, Ua_w, va_w)
    assert ctx.shape == (N, K) and attw.shape == (N, L)
    assert jnp.allclose(ctx, ctx_ref, atol=1e-4, rtol=1e-4)
    assert jnp.allclose(attw, attw_ref, atol=1e-4, rtol=1e-4)

    # 2) f32 path, multi-step grid with a ragged last block (no pad copy)
    N2 = 20
    k_lh2, k_eo2 = jax.random.split(jax.random.PRNGKey(1), 2)
    lh2 = jax.random.normal(k_lh2, (N2, Q), dtype=jnp.float32)
    eo2 = jax.random.normal(k_eo2, (N2, L, K), dtype=jnp.float32)
    ctx2, attw2 = attention_forward(lh2, eo2, Wa_w, Ua_w, va_w)
    jax.block_until_ready((ctx2, attw2))
    ctx2_ref, attw2_ref = attention_reference(lh2, eo2, Wa_w, Ua_w, va_w)
    assert ctx2.shape == (N2, K) and attw2.shape == (N2, L)
    assert jnp.allclose(ctx2, ctx2_ref, atol=1e-4, rtol=1e-4)
    assert jnp.allclose(attw2, attw2_ref, atol=1e-4, rtol=1e-4)

    # 3) bf16 fast path (halved HBM bytes + approx reciprocal): looser tolerance
    ctx3, attw3 = attention_forward(lh2, eo2, Wa_w, Ua_w, va_w,
                                    compute_dtype=jnp.bfloat16)
    jax.block_until_ready((ctx3, attw3))
    assert ctx3.shape == (N2, K) and attw3.shape == (N2, L)
    assert jnp.allclose(ctx3, ctx2_ref, atol=5e-2, rtol=5e-2)
    assert jnp.allclose(attw3, attw2_ref, atol=5e-2, rtol=5e-2)

    print("KERNEL_OK")
</pallas_src>

<mosaic_0001>
module attributes {stable_mosaic.version = 11 : i64} {
  func.func @attention_kernel(%arg0: i32, %arg1: memref<2x32xf32, #tpu.memory_space<vmem>>, %arg2: memref<2x256xf32, #tpu.memory_space<vmem>>, %arg3: memref<256x256xf32, #tpu.memory_space<vmem>>, %arg4: memref<256x8xf32, #tpu.memory_space<vmem>>, %arg5: memref<2x32xf32, #tpu.memory_space<vmem>>, %arg6: memref<2x8xf32, #tpu.memory_space<vmem>>) attributes {dimension_semantics = [#tpu.dimension_semantics<parallel>], iteration_bounds = array<i64: 1>, scalar_prefetch = 0 : i64, scratch_operands = 0 : i64, tpu.core_type = #tpu.core_type<tc>, window_params = [{transform_indices = @transform_0, window_bounds = array<i64: 2, 32>}, {transform_indices = @transform_1, window_bounds = array<i64: 2, 256>}, {pipeline_mode = #tpu.pipeline_mode<synchronous>, transform_indices = @transform_2, window_bounds = array<i64: 256, 256>}, {pipeline_mode = #tpu.pipeline_mode<synchronous>, transform_indices = @transform_3, window_bounds = array<i64: 256, 8>}, {transform_indices = @transform_4, window_bounds = array<i64: 2, 32>}, {transform_indices = @transform_5, window_bounds = array<i64: 2, 8>}]} {
    %c0 = arith.constant 0 : index
    %c0_0 = arith.constant 0 : index
    %0 = vector.load %arg2[%c0, %c0_0] : memref<2x256xf32, #tpu.memory_space<vmem>>, vector<2x256xf32>
    %c0_1 = arith.constant 0 : index
    %c0_2 = arith.constant 0 : index
    %1 = vector.load %arg3[%c0_1, %c0_2] : memref<256x256xf32, #tpu.memory_space<vmem>>, vector<256x256xf32>
    %cst = arith.constant dense<0.000000e+00> : vector<2x256xf32>
    %2 = tpu.matmul %0, %1, %cst {dimension_numbers = #tpu.dot_dimension_numbers<[1], [0], [0], [1], [0, 0, 1, 1], [], []>} : vector<2x256xf32>, vector<256x256xf32>, vector<2x256xf32> -> vector<2x256xf32>
    %c0_3 = arith.constant 0 : index
    %c0_4 = arith.constant 0 : index
    %3 = vector.load %arg1[%c0_3, %c0_4] : memref<2x32xf32, #tpu.memory_space<vmem>>, vector<2x32xf32>
    %4 = tpu.concatenate %3, %3, %3, %3, %3, %3, %3, %3 in 1 : vector<2x32xf32>, vector<2x32xf32>, vector<2x32xf32>, vector<2x32xf32>, vector<2x32xf32>, vector<2x32xf32>, vector<2x32xf32>, vector<2x32xf32> -> vector<2x256xf32>
    %5 = arith.addf %2, %4 : vector<2x256xf32>
    %6 = math.tanh %5 : vector<2x256xf32>
    %c0_5 = arith.constant 0 : index
    %c0_6 = arith.constant 0 : index
    %7 = vector.load %arg4[%c0_5, %c0_6] : memref<256x8xf32, #tpu.memory_space<vmem>>, vector<256x8xf32>
    %cst_7 = arith.constant dense<0.000000e+00> : vector<2x8xf32>
    %8 = tpu.matmul %6, %7, %cst_7 {dimension_numbers = #tpu.dot_dimension_numbers<[1], [0], [0], [1], [0, 0, 1, 1], [], []>} : vector<2x256xf32>, vector<256x8xf32>, vector<2x8xf32> -> vector<2x8xf32>
    %cst_8 = arith.constant dense<0xFF800000> : vector<2xf32>
    %9 = vector.multi_reduction <maximumf>, %8, %cst_8 [1] : vector<2x8xf32> to vector<2xf32>
    %10 = vector.shape_cast %9 : vector<2xf32> to vector<2x1xf32>
    %11 = vector.broadcast %10 : vector<2x1xf32> to vector<2x8xf32>
    %12 = arith.subf %8, %11 : vector<2x8xf32>
    %13 = math.exp %12 : vector<2x8xf32>
    %cst_9 = arith.constant dense<0.000000e+00> : vector<2xf32>
    %14 = vector.multi_reduction <add>, %13, %cst_9 [1] : vector<2x8xf32> to vector<2xf32>
    %15 = vector.shape_cast %14 : vector<2xf32> to vector<2x1xf32>
    %16 = vector.broadcast %15 : vector<2x1xf32> to vector<2x8xf32>
    %17 = arith.divf %13, %16 : vector<2x8xf32>
    %cst_10 = arith.constant 0.000000e+00 : f32
    %18 = vector.broadcast %cst_10 : f32 to vector<2x32xf32>
    %19 = vector.extract_strided_slice %17 {offsets = [0, 0], sizes = [2, 1], strides = [1, 1]} : vector<2x8xf32> to vector<2x1xf32>
    %20 = vector.extract_strided_slice %0 {offsets = [0, 0], sizes = [2, 32], strides = [1, 1]} : vector<2x256xf32> to vector<2x32xf32>
    %21 = vector.broadcast %19 : vector<2x1xf32> to vector<2x32xf32>
    %22 = arith.mulf %21, %20 : vector<2x32xf32>
    %23 = arith.addf %18, %22 : vector<2x32xf32>
    %24 = vector.extract_strided_slice %17 {offsets = [0, 1], sizes = [2, 1], strides = [1, 1]} : vector<2x8xf32> to vector<2x1xf32>
    %25 = vector.extract_strided_slice %0 {offsets = [0, 32], sizes = [2, 32], strides = [1, 1]} : vector<2x256xf32> to vector<2x32xf32>
    %26 = vector.broadcast %24 : vector<2x1xf32> to vector<2x32xf32>
    %27 = arith.mulf %26, %25 : vector<2x32xf32>
    %28 = arith.addf %23, %27 : vector<2x32xf32>
    %29 = vector.extract_strided_slice %17 {offsets = [0, 2], sizes = [2, 1], strides = [1, 1]} : vector<2x8xf32> to vector<2x1xf32>
    %30 = vector.extract_strided_slice %0 {offsets = [0, 64], sizes = [2, 32], strides = [1, 1]} : vector<2x256xf32> to vector<2x32xf32>
    %31 = vector.broadcast %29 : vector<2x1xf32> to vector<2x32xf32>
    %32 = arith.mulf %31, %30 : vector<2x32xf32>
    %33 = arith.addf %28, %32 : vector<2x32xf32>
    %34 = vector.extract_strided_slice %17 {offsets = [0, 3], sizes = [2, 1], strides = [1, 1]} : vector<2x8xf32> to vector<2x1xf32>
    %35 = vector.extract_strided_slice %0 {offsets = [0, 96], sizes = [2, 32], strides = [1, 1]} : vector<2x256xf32> to vector<2x32xf32>
    %36 = vector.broadcast %34 : vector<2x1xf32> to vector<2x32xf32>
    %37 = arith.mulf %36, %35 : vector<2x32xf32>
    %38 = arith.addf %33, %37 : vector<2x32xf32>
    %39 = vector.extract_strided_slice %17 {offsets = [0, 4], sizes = [2, 1], strides = [1, 1]} : vector<2x8xf32> to vector<2x1xf32>
    %40 = vector.extract_strided_slice %0 {offsets = [0, 128], sizes = [2, 32], strides = [1, 1]} : vector<2x256xf32> to vector<2x32xf32>
    %41 = vector.broadcast %39 : vector<2x1xf32> to vector<2x32xf32>
    %42 = arith.mulf %41, %40 : vector<2x32xf32>
    %43 = arith.addf %38, %42 : vector<2x32xf32>
    %44 = vector.extract_strided_slice %17 {offsets = [0, 5], sizes = [2, 1], strides = [1, 1]} : vector<2x8xf32> to vector<2x1xf32>
    %45 = vector.extract_strided_slice %0 {offsets = [0, 160], sizes = [2, 32], strides = [1, 1]} : vector<2x256xf32> to vector<2x32xf32>
    %46 = vector.broadcast %44 : vector<2x1xf32> to vector<2x32xf32>
    %47 = arith.mulf %46, %45 : vector<2x32xf32>
    %48 = arith.addf %43, %47 : vector<2x32xf32>
    %49 = vector.extract_strided_slice %17 {offsets = [0, 6], sizes = [2, 1], strides = [1, 1]} : vector<2x8xf32> to vector<2x1xf32>
    %50 = vector.extract_strided_slice %0 {offsets = [0, 192], sizes = [2, 32], strides = [1, 1]} : vector<2x256xf32> to vector<2x32xf32>
    %51 = vector.broadcast %49 : vector<2x1xf32> to vector<2x32xf32>
    %52 = arith.mulf %51, %50 : vector<2x32xf32>
    %53 = arith.addf %48, %52 : vector<2x32xf32>
    %54 = vector.extract_strided_slice %17 {offsets = [0, 7], sizes = [2, 1], strides = [1, 1]} : vector<2x8xf32> to vector<2x1xf32>
    %55 = vector.extract_strided_slice %0 {offsets = [0, 224], sizes = [2, 32], strides = [1, 1]} : vector<2x256xf32> to vector<2x32xf32>
    %56 = vector.broadcast %54 : vector<2x1xf32> to vector<2x32xf32>
    %57 = arith.mulf %56, %55 : vector<2x32xf32>
    %58 = arith.addf %53, %57 : vector<2x32xf32>
    %c0_11 = arith.constant 0 : index
    %c0_12 = arith.constant 0 : index
    %59 = vector.load %arg5[%c0_11, %c0_12] : memref<2x32xf32, #tpu.memory_space<vmem>>, vector<2x32xf32>
    tpu.vector_store %arg5[%c0_11, %c0_12], %58 {strides = array<i32>} : memref<2x32xf32, #tpu.memory_space<vmem>>, vector<2x32xf32>,
    %c0_13 = arith.constant 0 : index
    %c0_14 = arith.constant 0 : index
    %60 = vector.load %arg6[%c0_13, %c0_14] : memref<2x8xf32, #tpu.memory_space<vmem>>, vector<2x8xf32>
    tpu.vector_store %arg6[%c0_13, %c0_14], %17 {strides = array<i32>} : memref<2x8xf32, #tpu.memory_space<vmem>>, vector<2x8xf32>,
    return
  }
  func.func @transform_0(%arg0: i32) -> (i32, i32) {
    %c0_i32 = arith.constant 0 : i32
    %c0_i32_0 = arith.constant 0 : i32
    return %arg0, %c0_i32 : i32, i32
  }
  func.func @transform_1(%arg0: i32) -> (i32, i32) {
    %c0_i32 = arith.constant 0 : i32
    %c0_i32_0 = arith.constant 0 : i32
    return %arg0, %c0_i32 : i32, i32
  }
  func.func @transform_2(%arg0: i32) -> (i32, i32) {
    %c0_i32 = arith.constant 0 : i32
    %c0_i32_0 = arith.constant 0 : i32
    %c0_i32_1 = arith.constant 0 : i32
    return %c0_i32, %c0_i32_0 : i32, i32
  }
  func.func @transform_3(%arg0: i32) -> (i32, i32) {
    %c0_i32 = arith.constant 0 : i32
    %c0_i32_0 = arith.constant 0 : i32
    %c0_i32_1 = arith.constant 0 : i32
    return %c0_i32, %c0_i32_0 : i32, i32
  }
  func.func @transform_4(%arg0: i32) -> (i32, i32) {
    %c0_i32 = arith.constant 0 : i32
    %c0_i32_0 = arith.constant 0 : i32
    return %arg0, %c0_i32 : i32, i32
  }
  func.func @transform_5(%arg0: i32) -> (i32, i32) {
    %c0_i32 = arith.constant 0 : i32
    %c0_i32_0 = arith.constant 0 : i32
    return %arg0, %c0_i32 : i32, i32
  }
}

</mosaic_0001>

<bundles_post_ra>
// kernel: tpu_custom_call.1
= control target key start
LH: loop header
LB: loop body
LE: loop exit
PB: predicated region body
PF: predicated region fallthrough
CT: control target
= control target key end

     0   :  { %11 = vsyncpa [#allocation3], 0  ;;  %s722_s0 = inlined_call_operand.vmem [shape: f32[2,32], index: 0, kind: input, shape index: {}]   ;;  %s723_s1 = inlined_call_operand.vmem [shape: f32[2,256], index: 1, kind: input, shape index: {}]   ;;  %s724_s2 = inlined_call_operand.hbm [shape: f32[256,256], index: 2, kind: input, shape index: {}]   ;;  %s725_s3 = inlined_call_operand.vmem [shape: f32[256,8], index: 3, kind: input, shape index: {}]   ;;  %s726_s4 = inlined_call_operand.hbm [shape: f32[2,32], index: 4, kind: output, shape index: {0}]   ;;  %s727_s5 = inlined_call_operand.hbm [shape: f32[2,8], index: 5, kind: output, shape index: {1}]  }
   0x1   :  { %12 = vsyncpa [#allocation4], 0 }
   0x2   :  { %13 = vsyncpa [#allocation7], 0  ;;  %s22_s20 = sshll.u32 %s724_s2, 4  ;;  %s533_s21 = smov [#allocation2]   ;;  %s23_s20 = int_to_ptr.hbm [resolvable:$true] %s22_s20 }
   0x3   :  { %s24_s22 = sshll.u32 %s533_s21, 4  ;;  %s534_s23 = smov 256   ;;  %s25_s22 = int_to_ptr.vmem [resolvable:$true] %s24_s22 }
   0x4   :  { %s535_s24 = smov 16  }
   0x5   :  { %30 = dma.hbm_to_vmem [thread:$0]  %s23_s20, 8192, %s25_s22, [#allocation3], %s534_s23, %s534_s23, %s535_s24  }
   0x6   :  { %527 = dma.done.wait [#allocation3], 8192  }
   0x7   :  { %528 = vsyncadd [#allocation3], 4294959104  ;;  %v68_v0 = vld [vmem:[#allocation2 + $0xf0] sm:$0xff]  ;;  %v69_v1 = vld [vmem:[#allocation2 + $0xf8] sm:$0xff]  ;;  %s536_s27 = smov 32   ;;  %s537_s6 = smov 96  }
   0x8   :  { %v66_v2 = vld [vmem:[#allocation2 + $0xe0] sm:$0xff]  ;;  %125 = vmatpush.msra.mxu0 %v68_v0  ;;  %165 = vmatpush.msra.mxu2 %v69_v1  ;;  %v100_v3 = vld [vmem:[#allocation2 + $0x1f0] sm:$0xff]  ;;  %v67_v4 = vld [vmem:[#allocation2 + $0xe8] sm:$0xff]  ;;  %s538_s13 = smov 64   ;;  %vm113_vm0 = vcmask 261120   ;;  %vm115_vm1 = vcmask 523264  }
   0x9   :  { %v101_v5 = vld [vmem:[#allocation2 + $0x1f8] sm:$0xff]  ;;  %145 = vmatpush.msra.mxu1 %v100_v3  ;;  %v64_v6 = vld [vmem:[#allocation2 + $0xd0] sm:$0xff]  ;;  %v98_v7 = vld [vmem:[#allocation2 + $0x1e0] sm:$0xff]  ;;  %vm117_vm2 = vcmask 785408   ;;  %vm279_vm3 = vcmask 58368   ;;  %s407_s21 = sshll.u32 %s727_s5, 4  ;;  %s408_s21 = int_to_ptr.hbm [resolvable:$true] %s407_s21 }
   0xa   :  { %185 = vmatpush.msra.mxu3 %v101_v5  ;;  %v65_v8 = vld [vmem:[#allocation2 + $0xd8] sm:$0xff]  ;;  %126 = vmatpush.msra.mxu0 %v66_v2  ;;  %v99_v9 = vld [vmem:[#allocation2 + $0x1e8] sm:$0xff]  ;;  %v96_v10 = vld [vmem:[#allocation2 + $0x1d0] sm:$0xff]  ;;  %s548_s5 = smov [#allocation5]   ;;  %s396_s22 = sshll.u32 %s726_s4, 4  ;;  %vm386_vm8 = vcmask 254976   ;;  %s397_s22 = int_to_ptr.hbm [resolvable:$true] %s396_s22 }
   0xb   :  { %166 = vmatpush.msra.mxu2 %v67_v4  ;;  %146 = vmatpush.msra.mxu1 %v98_v7  ;;  %v62_v11 = vld [vmem:[#allocation2 + $0xc0] sm:$0xff]  ;;  %v63_v12 = vld [vmem:[#allocation2 + $0xc8] sm:$0xff]  ;;  %v97_v13 = vld [vmem:[#allocation2 + $0x1d8] sm:$0xff] }
   0xc   :  { %186 = vmatpush.msra.mxu3 %v99_v9  ;;  %127 = vmatpush.msra.mxu0 %v64_v6  ;;  %v94_v14 = vld [vmem:[#allocation2 + $0x1c0] sm:$0xff]  ;;  %v95_v15 = vld [vmem:[#allocation2 + $0x1c8] sm:$0xff]  ;;  %v60_v16 = vld [vmem:[#allocation2 + $0xb0] sm:$0xff] }
   0xd   :  { %167 = vmatpush.msra.mxu2 %v65_v8  ;;  %147 = vmatpush.msra.mxu1 %v96_v10  ;;  %v61_v17 = vld [vmem:[#allocation2 + $0xb8] sm:$0xff]  ;;  %v92_v18 = vld [vmem:[#allocation2 + $0x1b0] sm:$0xff]  ;;  %v58_v20 = vld [vmem:[#allocation2 + $0xa0] sm:$0xff] }
   0xe   :  { %187 = vmatpush.msra.mxu3 %v97_v13  ;;  %128 = vmatpush.msra.mxu0 %v62_v11  ;;  %v93_v19 = vld [vmem:[#allocation2 + $0x1b8] sm:$0xff]  ;;  %v59_v21 = vld [vmem:[#allocation2 + $0xa8] sm:$0xff]  ;;  %v90_v22 = vld [vmem:[#allocation2 + $0x1a0] sm:$0xff] }
   0xf   :  { %168 = vmatpush.msra.mxu2 %v63_v12  ;;  %148 = vmatpush.msra.mxu1 %v94_v14  ;;  %v91_v23 = vld [vmem:[#allocation2 + $0x1a8] sm:$0xff]  ;;  %v56_v24 = vld [vmem:[#allocation2 + $0x90] sm:$0xff]  ;;  %v57_v25 = vld [vmem:[#allocation2 + $0x98] sm:$0xff] }
  0x10   :  { %188 = vmatpush.msra.mxu3 %v95_v15  ;;  %129 = vmatpush.msra.mxu0 %v60_v16  ;;  %v88_v26 = vld [vmem:[#allocation2 + $0x190] sm:$0xff]  ;;  %v89_v27 = vld [vmem:[#allocation2 + $0x198] sm:$0xff]  ;;  %v54_v28 = vld [vmem:[#allocation2 + $0x80] sm:$0xff] }
  0x11   :  { %169 = vmatpush.msra.mxu2 %v61_v17  ;;  %149 = vmatpush.msra.mxu1 %v92_v18  ;;  %v55_v29 = vld [vmem:[#allocation2 + $0x88] sm:$0xff]  ;;  %v86_v30 = vld [vmem:[#allocation2 + $0x180] sm:$0xff]  ;;  %v52_v32 = vld [vmem:[#allocation2 + $0x70] sm:$0xff] }
  0x12   :  { %189 = vmatpush.msra.mxu3 %v93_v19  ;;  %130 = vmatpush.msra.mxu0 %v58_v20  ;;  %v87_v31 = vld [vmem:[#allocation2 + $0x188] sm:$0xff]  ;;  %v53_v33 = vld [vmem:[#allocation2 + $0x78] sm:$0xff]  ;;  %v84_v34 = vld [vmem:[#allocation2 + $0x170] sm:$0xff] }
  0x13   :  { %170 = vmatpush.msra.mxu2 %v59_v21  ;;  %150 = vmatpush.msra.mxu1 %v90_v22  ;;  %v85_v35 = vld [vmem:[#allocation2 + $0x178] sm:$0xff]  ;;  %v50_v36 = vld [vmem:[#allocation2 + $0x60] sm:$0xff]  ;;  %v51_v37 = vld [vmem:[#allocation2 + $0x68] sm:$0xff] }
  0x14   :  { %190 = vmatpush.msra.mxu3 %v91_v23  ;;  %131 = vmatpush.msra.mxu0 %v56_v24  ;;  %v82_v38 = vld [vmem:[#allocation2 + $0x160] sm:$0xff]  ;;  %v83_v39 = vld [vmem:[#allocation2 + $0x168] sm:$0xff]  ;;  %v48_v40 = vld [vmem:[#allocation2 + $0x50] sm:$0xff] }
  0x15   :  { %171 = vmatpush.msra.mxu2 %v57_v25  ;;  %151 = vmatpush.msra.mxu1 %v88_v26  ;;  %v49_v41 = vld [vmem:[#allocation2 + $0x58] sm:$0xff]  ;;  %v80_v42 = vld [vmem:[#allocation2 + $0x150] sm:$0xff]  ;;  %v46_v44 = vld [vmem:[#allocation2 + $0x40] sm:$0xff] }
  0x16   :  { %191 = vmatpush.msra.mxu3 %v89_v27  ;;  %132 = vmatpush.msra.mxu0 %v54_v28  ;;  %v81_v43 = vld [vmem:[#allocation2 + $0x158] sm:$0xff]  ;;  %v47_v45 = vld [vmem:[#allocation2 + $0x48] sm:$0xff]  ;;  %v78_v46 = vld [vmem:[#allocation2 + $0x140] sm:$0xff] }
  0x17   :  { %172 = vmatpush.msra.mxu2 %v55_v29  ;;  %152 = vmatpush.msra.mxu1 %v86_v30  ;;  %v79_v47 = vld [vmem:[#allocation2 + $0x148] sm:$0xff]  ;;  %v585_v48 = vld [vmem:[%s723_s1] sm:$0xf]  ;;  %v44_v49 = vld [vmem:[#allocation2 + $0x30] sm:$0xff] }
  0x18   :  { %192 = vmatpush.msra.mxu3 %v87_v31  ;;  %133 = vmatpush.msra.mxu0 %v52_v32  ;;  %v45_v50 = vld [vmem:[#allocation2 + $0x38] sm:$0xff]  ;;  %120 = vst [vmem:[#allocation1] ss:$4 sm:$0xff] %v585_v48  ;;  %v76_v51 = vld [vmem:[#allocation2 + $0x130] sm:$0xff]  ;;  %v42_v53 = vld [vmem:[#allocation2 + $0x20] sm:$0xff] }
  0x19   :  { %173 = vmatpush.msra.mxu2 %v53_v33  ;;  %153 = vmatpush.msra.mxu1 %v84_v34  ;;  %v77_v52 = vld [vmem:[#allocation2 + $0x138] sm:$0xff]  ;;  %v43_v54 = vld [vmem:[#allocation2 + $0x28] sm:$0xff]  ;;  %v74_v55 = vld [vmem:[#allocation2 + $0x120] sm:$0xff] }
  0x1a   :  { %193 = vmatpush.msra.mxu3 %v85_v35  ;;  %134 = vmatpush.msra.mxu0 %v50_v36  ;;  %v75_v56 = vld [vmem:[#allocation2 + $0x128] sm:$0xff]  ;;  %v40_v57 = vld [vmem:[#allocation2 + $0x10] sm:$0xff]  ;;  %v41_v58 = vld [vmem:[#allocation2 + $0x18] sm:$0xff] }
  0x1b   :  { %174 = vmatpush.msra.mxu2 %v51_v37  ;;  %154 = vmatpush.msra.mxu1 %v82_v38  ;;  %v72_v59 = vld [vmem:[#allocation2 + $0x110] sm:$0xff]  ;;  %v73_v60 = vld [vmem:[#allocation2 + $0x118] sm:$0xff]  ;;  %v38_v61 = vld [vmem:[#allocation2] sm:$0xff] }
  0x1c   :  { %194 = vmatpush.msra.mxu3 %v83_v39  ;;  %135 = vmatpush.msra.mxu0 %v48_v40  ;;  %v39_v62 = vld [vmem:[#allocation2 + $0x8] sm:$0xff]  ;;  %v591_v63 = vld [vmem:[%s722_s0] sm:$0x3]  ;;  %v70_v2 = vld [vmem:[#allocation2 + $0x100] sm:$0xff] }
  0x1d   :  { %175 = vmatpush.msra.mxu2 %v49_v41  ;;  %155 = vmatpush.msra.mxu1 %v80_v42  ;;  %v71_v3 = vld [vmem:[#allocation2 + $0x108] sm:$0xff]  ;;  %v222_v4 = vld [vmem:[%s725_s3 + $0x78] sm:$0xff]  ;;  %v220_v7 = vld [vmem:[%s725_s3 + $0x68] sm:$0xff] }
  0x1e   :  { %195 = vmatpush.msra.mxu3 %v81_v43  ;;  %136 = vmatpush.msra.mxu0 %v46_v44  ;;  %v238_v5 = vld [vmem:[%s725_s3 + $0xf8] sm:$0xff]  ;;  %v221_v6 = vld [vmem:[%s725_s3 + $0x70] sm:$0xff]  ;;  %v219_v8 = vld [vmem:[%s725_s3 + $0x60] sm:$0xff] }
  0x1f   :  { %176 = vmatpush.msra.mxu2 %v47_v45  ;;  %156 = vmatpush.msra.mxu1 %v78_v46  ;;  %v121_v0 = vld.sshfl [vmem:[#allocation1] sm:$0xff pattern:$0x73625140]  ;;  %v122_v1 = vld.sshfl [vmem:[#allocation1 + $0x8] sm:$0xff pattern:$0x73625140] }
  0x20   :  { %196 = vmatpush.msra.mxu3 %v79_v47  ;;  %137 = vmatpush.msra.mxu0 %v44_v49  ;;  %315 = vst [vmem:[#allocation1] ss:$4 sm:$0xff] %v585_v48  ;;  %v218_v9 = vld [vmem:[%s725_s3 + $0x58] sm:$0xff]  ;;  %v237_v10 = vld [vmem:[%s725_s3 + $0xf0] sm:$0xff]  ;;  %v236_v12 = vld [vmem:[%s725_s3 + $0xe8] sm:$0xff] }
  0x21   :  { %177 = vmatpush.msra.mxu2 %v45_v50  ;;  %157 = vmatpush.msra.mxu1 %v76_v51  ;;  %v217_v11 = vld [vmem:[%s725_s3 + $0x50] sm:$0xff]  ;;  %v216_v13 = vld [vmem:[%s725_s3 + $0x48] sm:$0xff]  ;;  %v235_v14 = vld [vmem:[%s725_s3 + $0xe0] sm:$0xff] }
  0x22   :  { %197 = vmatpush.msra.mxu3 %v77_v52  ;;  %138 = vmatpush.msra.mxu0 %v42_v53  ;;  %v215_v15 = vld [vmem:[%s725_s3 + $0x40] sm:$0xff]  ;;  %v234_v16 = vld [vmem:[%s725_s3 + $0xd8] sm:$0xff]  ;;  %v233_v18 = vld [vmem:[%s725_s3 + $0xd0] sm:$0xff] }
  0x23   :  { %178 = vmatpush.msra.mxu2 %v43_v54  ;;  %158 = vmatpush.msra.mxu1 %v74_v55  ;;  %v214_v17 = vld [vmem:[%s725_s3 + $0x38] sm:$0xff]  ;;  %v213_v19 = vld [vmem:[%s725_s3 + $0x30] sm:$0xff]  ;;  %v232_v20 = vld [vmem:[%s725_s3 + $0xc8] sm:$0xff] }
  0x24   :  { %198 = vmatpush.msra.mxu3 %v75_v56  ;;  %139 = vmatpush.msra.mxu0 %v40_v57  ;;  %v212_v21 = vld [vmem:[%s725_s3 + $0x28] sm:$0xff]  ;;  %v231_v22 = vld [vmem:[%s725_s3 + $0xc0] sm:$0xff]  ;;  %v230_v24 = vld [vmem:[%s725_s3 + $0xb8] sm:$0xff] }
  0x25   :  { %179 = vmatpush.msra.mxu2 %v41_v58  ;;  %159 = vmatpush.msra.mxu1 %v72_v59  ;;  %v211_v23 = vld [vmem:[%s725_s3 + $0x20] sm:$0xff]  ;;  %v210_v25 = vld [vmem:[%s725_s3 + $0x18] sm:$0xff]  ;;  %v229_v26 = vld [vmem:[%s725_s3 + $0xb0] sm:$0xff] }
  0x26   :  { %199 = vmatpush.msra.mxu3 %v73_v60  ;;  %140 = vmatpush.msra.mxu0 %v38_v61  ;;  %v209_v27 = vld [vmem:[%s725_s3 + $0x10] sm:$0xff]  ;;  %v228_v28 = vld [vmem:[%s725_s3 + $0xa8] sm:$0xff]  ;;  %v227_v30 = vld [vmem:[%s725_s3 + $0xa0] sm:$0xff] }
  0x27   :  { %180 = vmatpush.msra.mxu2 %v39_v62  ;;  %104 = vrot.lane.b32.xlu0 %v591_v63, %s536_s27  ;;  %v208_v29 = vld [vmem:[%s725_s3 + $0x8] sm:$0xff]  ;;  %v207_v31 = vld [vmem:[%s725_s3] sm:$0xff]  ;;  %v226_v32 = vld [vmem:[%s725_s3 + $0x98] sm:$0xff] }
  0x28   :  { %141 = vmatmul.f32.vlgmr.msra.gmra.mxu0 %v121_v0  ;;  %181 = vmatmul.f32.vlgmr.msra.gmra.mxu2 %v121_v0  ;;  %v225_v33 = vld [vmem:[%s725_s3 + $0x90] sm:$0xff]  ;;  %v224_v34 = vld [vmem:[%s725_s3 + $0x88] sm:$0xff]  ;;  %v223_v35 = vld [vmem:[%s725_s3 + $0x80] sm:$0xff]  ;;  %s544_s3 = smov [#allocation6]  }
  0x29   :  { %160 = vmatpush.msra.mxu1 %v70_v2  ;;  %200 = vmatpush.msra.mxu3 %v71_v3  ;;  %v316_v57 = vld.sshfl [vmem:[#allocation1] sm:$0xff pattern:$0x73625140]  ;;  %v539_v2 = vmov 5   ;;  %v540_v3 = vmov 1   ;;  %s405_s18 = sshll.u32 %s544_s3, 4  ;;  %s406_s18 = int_to_ptr.vmem [resolvable:$true] %s405_s18 }
  0x2a   :  { %161 = vmatmul.f32.vlgmr.msra.gmra.mxu1 %v122_v1  ;;  %201 = vmatmul.f32.vlgmr.msra.gmra.mxu3 %v122_v1  ;;  %326 = vst [vmem:[#allocation1] ss:$4 sm:$0xff] %v585_v48 }
  0x2b   :  { %110 = vrot.lane.b32.xlu1 %v591_v63, %s537_s6  ;;  %239 = vmatpush.msrb.mxu0 %v222_v4  ;;  %v541_v4 = vmov 0  }
  0x2c   :  { %259 = vmatpush.msrb.mxu1 %v238_v5  ;;  %443 = vset.pattern.permute.xlu1 %v539_v2 }
  0x2d   :  { %240 = vmatpush.msrb.mxu0 %v221_v6  ;;  %439 = vset.pattern.permute.xlu0 %v540_v3 }
  0x2e   :  { %260 = vmatpush.msrb.mxu1 %v237_v10  ;;  %438 = vset.pattern.permute.xlu2 %v541_v4 }
  0x2f   :  { %107 = vrot.lane.b32.xlu0 %v591_v63, %s538_s13  ;;  %241 = vmatpush.msrb.mxu0 %v220_v7 }
  0x30   :  { %261 = vmatpush.msrb.mxu1 %v236_v12 }
  0x31   :  { %242 = vmatpush.msrb.mxu0 %v219_v8 }
  0x32   :  { %262 = vmatpush.msrb.mxu1 %v235_v14 }
  0x33   :  { %243 = vmatpush.msrb.mxu0 %v218_v9 }
  0x34   :  { %263 = vmatpush.msrb.mxu1 %v234_v16 }
  0x35   :  { %244 = vmatpush.msrb.mxu0 %v217_v11 }
  0x36   :  { %264 = vmatpush.msrb.mxu1 %v233_v18 }
  0x37   :  { %245 = vmatpush.msrb.mxu0 %v216_v13  ;;  %317 = vrot.lane.b32.xlu0 %v316_v57, %s537_s6 }
  0x38   :  { %265 = vmatpush.msrb.mxu1 %v232_v20  ;;  %v543_v20 = vmov 7  }
  0x39   :  { %246 = vmatpush.msrb.mxu0 %v215_v15 }
  0x3a   :  { %266 = vmatpush.msrb.mxu1 %v231_v22 }
  0x3b   :  { %247 = vmatpush.msrb.mxu0 %v214_v17 }
  0x3c   :  { %267 = vmatpush.msrb.mxu1 %v230_v24  ;;  %v547_v24 = vmov 6  }
  0x3d   :  { %248 = vmatpush.msrb.mxu0 %v213_v19  ;;  %v542_v19 = vmov 2  }
  0x3e   :  { %268 = vmatpush.msrb.mxu1 %v229_v26 }
  0x3f   :  { %249 = vmatpush.msrb.mxu0 %v212_v21  ;;  %v545_v21 = vmov 3  }
  0x40   :  { %269 = vmatpush.msrb.mxu1 %v228_v28 }
  0x41   :  { %250 = vmatpush.msrb.mxu0 %v211_v23  ;;  %v546_v23 = vmov 4  }
  0x42   :  { %270 = vmatpush.msrb.mxu1 %v227_v30 }
  0x43   :  { %251 = vmatpush.msrb.mxu0 %v210_v25 }
  0x44   :  { %271 = vmatpush.msrb.mxu1 %v226_v32 }
  0x45   :  { %252 = vmatpush.msrb.mxu0 %v209_v27 }
  0x46   :  { %272 = vmatpush.msrb.mxu1 %v225_v33 }
  0x47   :  { %253 = vmatpush.msrb.mxu0 %v208_v29 }
  0x48   :  { %273 = vmatpush.msrb.mxu1 %v224_v34 }
  0x49   :  { %254 = vmatpush.msrb.mxu0 %v207_v31 }
  0x4a   :  { %274 = vmatpush.msrb.mxu1 %v223_v35 }
  0x99   :  { %v105_v36 = vpop.permute.xlu0 %104 }
  0x9a   :  { %v114_v37 = vsel %vm113_vm0, %v591_v63, %v105_v36  ;;  %v327_v63 = vld.sshfl [vmem:[#allocation1] sm:$0xff pattern:$0x73625140] }
  0x9b   :  { %328 = vrot.lane.b32.xlu0 %v327_v63, %s538_s13  ;;  %337 = vst [vmem:[#allocation1] ss:$4 sm:$0xff] %v585_v48 }
  0x9d   :  { %v111_v38 = vpop.permute.xlu1 %110 }
  0xa1   :  { %v108_v39 = vpop.permute.xlu0 %107 }
  0xa2   :  { %v116_v40 = vsel %vm115_vm1, %v114_v37, %v108_v39  ;;  %v338_v0 = vld.sshfl [vmem:[#allocation1] sm:$0xff pattern:$0x73625140] }
  0xa3   :  { %v118_v41 = vsel %vm117_vm2, %v116_v40, %v111_v38  ;;  %339 = vrot.lane.b32.xlu0 %v338_v0, %s536_s27  ;;  %348 = vst [vmem:[#allocation1] ss:$4 sm:$0xff] %v585_v48 }
  0xa5   :  { %v142_v42 = vpop.f32.mrf.mxu0 }
  0xa6   :  { %v143_v43 = vadd.f32 %v142_v42, %v118_v41 }
  0xa7   :  { %v162_v44 = vpop.f32.mrf.mxu1 }
  0xa8   :  { %v163_v45 = vadd.f32 %v162_v44, %v143_v43 }
  0xa9   :  { %v318_v25 = vpop.permute.xlu0 %317 }
  0xaa   :  { %447 = vtanh.f32 %v163_v45  ;;  %v705_v1 = vld.sshfl [vmem:[#allocation1 + $0x8] sm:$0xff pattern:$0x73625140] }
  0xab   :  { %v182_v46 = vpop.f32.mrf.mxu2  ;;  %357 = vst [vmem:[#allocation1] ss:$4 sm:$0xff] %v585_v48 }
  0xac   :  { %v183_v47 = vadd.f32 %v182_v46, %v118_v41 }
  0xad   :  { %v202_v49 = vpop.f32.mrf.mxu3 }
  0xae   :  { %v203_v50 = vadd.f32 %v202_v49, %v183_v47 }
  0xb0   :  { %v448_v51 = vpop.eup %447  ;;  %449 = vtanh.f32 %v203_v50 }
  0xb1   :  { %255 = vmatmul.f32.vlgmr.msrb.gmra.mxu0 %v448_v51 }
  0xb2   :  { %v358_v5 = vld.sshfl [vmem:[#allocation1 + $0x8] sm:$0xff pattern:$0x73625140] }
  0xb3   :  { %368 = vst [vmem:[#allocation1] ss:$4 sm:$0xff] %v585_v48 }
  0xb6   :  { %v450_v52 = vpop.eup %449 }
  0xb7   :  { %275 = vmatmul.f32.vlgmr.msrb.gmra.mxu1 %v450_v52 }
  0xba   :  { %v369_v7 = vld.sshfl [vmem:[#allocation1 + $0x8] sm:$0xff pattern:$0x73625140] }
  0xbb   :  { %379 = vst [vmem:[#allocation1] ss:$4 sm:$0xff] %v585_v48 }
  0xc2   :  { %v380_v22 = vld.sshfl [vmem:[#allocation1 + $0x8] sm:$0xff pattern:$0x73625140] }
 0x10d   :  { %v329_v27 = vpop.permute.xlu0 %328 }
 0x115   :  { %v340_v29 = vpop.permute.xlu0 %339 }
 0x12e   :  { %v256_v53 = vpop.f32.mrf.mxu0 }
 0x134   :  { %v276_v54 = vpop.f32.mrf.mxu1 }
 0x135   :  { %v277_v55 = vadd.f32 %v276_v54, %v256_v53 }
 0x137   :  { %v280_v56 = vsel %vm279_vm3, %v277_v55, -inf }
 0x138   :  { %281 = vmax.xlane.f32.xlu1 %v280_v56 }
 0x1ab   :  { %v282_v58 = vpop.xlane.xlu1 %281 }
 0x1ac   :  { %v283_v59 = vsub.f32 %v277_v55, %v282_v58 }
 0x1ae   :  { %v284_v60 = vmul.f32 1.442695, %v283_v59 }
 0x1b0   :  { %451 = vpow2.f32 %v284_v60 }
 0x1b6   :  { %v452_v61 = vpop.eup %451 }
 0x1b7   :  { %v286_v62 = vsel %vm279_vm3, %v452_v61, 0.0 }
 0x1b8   :  { %287 = vadd.xlane.f32.xlu2 %v286_v62 }
 0x22b   :  { %v288_v6 = vpop.xlane.xlu2 %287 }
 0x22c   :  { %453 = vrcp.f32 %v288_v6  ;;  %v300_v11 = vand.u32 2147483648, %v288_v6  ;;  %v298_v13 = vand.u32 2147483647, %v288_v6  ;;  %vm294_vm5 = vweird.f32 %v288_v6 }
 0x22e   :  { %v301_v15 = vor.u32 1.1754944e-38, %v300_v11  ;;  %vm299_vm7 = vcmp.eq.f32.partialorder %v298_v13, 8.507059e+37 }
 0x232   :  { %v454_v8 = vpop.eup %453 }
 0x233   :  { %v290_v9 = vmul.f32 %v454_v8, %v288_v6  ;;  %vm295_vm4 = vweird.f32 %v454_v8 }
 0x234   :  { %vm296_vm6 = vmor %vm294_vm5, %vm295_vm4 }
 0x235   :  { %v291_v10 = vsub.f32 1.0, %v290_v9 }
 0x237   :  { %v292_v12 = vmul.f32 %v454_v8, %v291_v10 }
 0x239   :  { %v293_v14 = vadd.f32 %v454_v8, %v292_v12 }
 0x23b   :  { %v297_v16 = vsel %vm296_vm6, %v454_v8, %v293_v14 }
 0x23c   :  { %v302_v17 = vsel %vm299_vm7, %v301_v15, %v297_v16 }
 0x23d   :  { %v303_v18 = vmul.f32 %v452_v61, %v302_v17 }
 0x23f   :  { %388 = vst.msk [vmem:[#allocation6] sm:$0x3] %vm279_vm3, %v303_v18  ;;  %354 = vperm.xlu1 %443, %v303_v18   ;;  %312 = vperm.xlu0 %439, %v303_v18  }
 0x240   :  { %306 = vperm.xlu2 %438, %v303_v18   ;;  %410 = dma.vmem_to_hbm [thread:$0]  %s406_s18, 32, %s408_s21, [#allocation7]  }
 0x247   :  { %359 = vrot.lane.b32.xlu0 %v358_v5, %s537_s6 }
 0x248   :  { %440 = vset.pattern.permute.xlu2 %v542_v19  ;;  %446 = vset.pattern.permute.xlu0 %v543_v20 }
 0x249   :  { %323 = vperm.xlu2 %440, %v303_v18  }
 0x24f   :  { %370 = vrot.lane.b32.xlu0 %v369_v7, %s538_s13 }
 0x251   :  { %441 = vset.pattern.permute.xlu2 %v545_v21 }
 0x252   :  { %334 = vperm.xlu2 %441, %v303_v18  }
 0x257   :  { %381 = vrot.lane.b32.xlu0 %v380_v22, %s536_s27  ;;  %s394_s27 = sshll.u32 %s548_s5, 4  ;;  %s395_s27 = int_to_ptr.vmem [resolvable:$true] %s394_s27 }
 0x25a   :  { %442 = vset.pattern.permute.xlu2 %v546_v23 }
 0x25b   :  { %345 = vperm.xlu2 %442, %v303_v18  }
 0x263   :  { %444 = vset.pattern.permute.xlu2 %v547_v24 }
 0x264   :  { %365 = vperm.xlu2 %444, %v303_v18  }
 0x26c   :  { %445 = vset.pattern.permute.xlu2 %v543_v20 }
 0x26d   :  { %376 = vperm.xlu2 %445, %v303_v18  }
 0x29a   :  { %v307_v26 = vpop.permute.xlu2 %306 }
 0x29b   :  { %v309_v34 = vmul.f32 %v307_v26, %v585_v48 }
 0x2a3   :  { %v324_v28 = vpop.permute.xlu2 %323 }
 0x2a4   :  { %v331_v37 = vmul.f32 %v329_v27, %v324_v28 }
 0x2ac   :  { %v335_v30 = vpop.permute.xlu2 %334 }
 0x2ad   :  { %v342_v39 = vmul.f32 %v340_v29, %v335_v30 }
 0x2b1   :  { %v313_v31 = vpop.permute.xlu0 %312  ;;  %v355_v44 = vpop.permute.xlu1 %354 }
 0x2b2   :  { %v320_v32 = vmul.f32 %v318_v25, %v313_v31 }
 0x2b4   :  { %v321_v35 = vadd.f32 %v320_v32, %v309_v34 }
 0x2b5   :  { %v346_v33 = vpop.permute.xlu2 %345 }
 0x2b6   :  { %v332_v38 = vadd.f32 %v331_v37, %v321_v35  ;;  %v351_v43 = vmul.f32 %v705_v1, %v346_v33 }
 0x2b8   :  { %v343_v41 = vadd.f32 %v342_v39, %v332_v38 }
 0x2b9   :  { %v360_v36 = vpop.permute.xlu0 %359 }
 0x2ba   :  { %v352_v45 = vadd.f32 %v351_v43, %v343_v41  ;;  %v362_v46 = vmul.f32 %v360_v36, %v355_v44 }
 0x2bc   :  { %v363_v49 = vadd.f32 %v362_v46, %v352_v45 }
 0x2be   :  { %v366_v40 = vpop.permute.xlu2 %365 }
 0x2c1   :  { %v371_v42 = vpop.permute.xlu0 %370 }
 0x2c2   :  { %v373_v47 = vmul.f32 %v371_v42, %v366_v40 }
 0x2c4   :  { %v374_v48 = vadd.f32 %v373_v47, %v363_v49 }
 0x2c7   :  { %v377_v50 = vpop.permute.xlu2 %376 }
 0x2c9   :  { %v382_v51 = vpop.permute.xlu0 %381 }
 0x2ca   :  { %v384_v52 = vmul.f32 %v382_v51, %v377_v50 }
 0x2cc   :  { %v385_v53 = vadd.f32 %v384_v52, %v374_v48 }
 0x2ce   :  { %387 = vst.msk [vmem:[#allocation5] sm:$0x3] %vm386_vm8, %v385_v53 }
 0x2cf   :  { %399 = dma.vmem_to_hbm [thread:$0]  %s395_s27, 32, %s397_s22, [#allocation4]  }
 0x2d0   :  { %529 = dma.done.wait [#allocation4], 32  }
 0x2d1   :  { %530 = vsyncadd [#allocation4], 4294967264 }
 0x2d2   :  { %531 = dma.done.wait [#allocation7], 32  }
 0x2d3   :  { %532 = vsyncadd [#allocation7], 4294967264 }
 0x2d4   :  { %419 = vsyncpa [#allocation3], 1 }
 0x2d5   :  { %420 = vsyncpa [#allocation4], 1 }
 0x2d6   :  { %421 = vsyncpa [#allocation7], 1 }

</bundles_post_ra>
